<compile_context>
chip_gen: v5e
topology: v5e:2x2
jax: 0.10.0
libtpu: 0.0.40
codegen_flags: <defaults>
</compile_context>

<pallas_src>
import functools

import jax
import jax.numpy as jnp
from jax.experimental import pallas as pl
from jax.experimental.pallas import tpu as pltpu


def _largest_divisor_at_most(n: int, cap: int) -> int:
    """Largest divisor of n that is <= cap (>=1)."""
    cap = max(1, min(n, cap))
    for d in range(cap, 0, -1):
        if n % d == 0:
            return d
    return 1


def _softprompt_dma_kernel(prompt_ref, x_ref, o_ref, prompt_blk, sems, *,
                           rows_per_step: int, n_x_chunks: int,
                           prompt_block_rows: int):
    """Pure-DMA concat: out[:, :P, :] = prompt (broadcast over B), out[:, P:, :] = x.

    prompt_ref: [1, P, D]     VMEM (auto-pipelined, resident across grid steps)
    x_ref:      [B, S, D]     HBM (memory_space=pl.ANY)
    o_ref:      [B, P+S, D]   HBM (memory_space=pl.ANY)
    prompt_blk: [Bp, P, D]    VMEM scratch (prompt replicated Bp times)
    sems:       DMA semaphores, shape (n_x_chunks + 1,)
    """
    B, S, D = x_ref.shape
    P = prompt_ref.shape[1]
    Bg = rows_per_step                # batch rows handled by this grid step
    Bx = Bg // n_x_chunks             # rows per x-chunk DMA
    Bp = prompt_block_rows            # rows per prompt-block DMA
    n_p = Bg // Bp

    b0 = pl.multiple_of(pl.program_id(0) * Bg, Bg)

    # 1) Start all x-chunk DMAs first (they carry >95% of the bytes). Several
    #    concurrent descriptors engage multiple DMA engines; all in flight
    #    before any wait.
    x_copies = []
    for j in range(n_x_chunks):
        row = b0 + j * Bx
        cp = pltpu.make_async_copy(
            x_ref.at[pl.ds(row, Bx), pl.ds(0, S), pl.ds(0, D)],
            o_ref.at[pl.ds(row, Bx), pl.ds(P, S), pl.ds(0, D)],
            sems.at[j],
        )
        cp.start()
        x_copies.append(cp)

    # 2) Replicate the prompt into a small VMEM block while the x DMAs are in
    #    flight (VMEM stores don't compete with the DMA engines, so this is
    #    hidden under the big copy).
    prompt_blk[...] = jnp.broadcast_to(prompt_ref[...], (Bp, P, D))

    # 3) Batched prompt writeback: one [Bp, P, D] DMA per block instead of one
    #    tiny [1, P, D] DMA per batch row. All blocks share one semaphore
    #    (identical byte counts -> accumulated signal/wait is exact).
    p_copies = []
    for j in range(n_p):
        cp = pltpu.make_async_copy(
            prompt_blk,
            o_ref.at[pl.ds(b0 + j * Bp, Bp), pl.ds(0, P), pl.ds(0, D)],
            sems.at[n_x_chunks],
        )
        cp.start()
        p_copies.append(cp)

    # 4) Drain everything issued by this grid step.
    for cp in p_copies:
        cp.wait()
    for cp in x_copies:
        cp.wait()


def soft_prompt_forward(soft_prompt: jax.Array, input_embeds: jax.Array, *,
                        x_chunks_target: int = 4,
                        prompt_block_bytes_cap: int = 4 * 1024 * 1024) -> jax.Array:
    """Prepend the soft prompt to every batch element.

    soft_prompt:  [P, D]
    input_embeds: [B, S, D]
    returns:      [B, P+S, D]
    """
    P, D = soft_prompt.shape
    B, S, Dx = input_embeds.shape
    assert D == Dx, "hidden dims must match"
    dtype = input_embeds.dtype
    itemsize = jnp.dtype(dtype).itemsize
    out_seq = P + S

    # Alignment note: the dominant x copy lands at seq offset P, so P should be
    # a multiple of the dtype's sublane packing tile (8 f32 / 16 bf16 /
    # 32 int8-fp8) for full-tile DMA transfers.  Unaligned P remains correct,
    # just slower.
    # TODO(synk): pad P to the packing tile and mask in attention if unaligned.

    # v7x has 2 TensorCores/chip: a parallel grid axis of 2 lets each core
    # issue its own DMA descriptors.  On v5e/v6e this is just two serial steps.
    grid_steps = 2 if (B >= 2 and B % 2 == 0) else 1
    rows_per_step = B // grid_steps

    # Modest number of concurrent x-chunk DMAs per step (2-4): enough to engage
    # multiple DMA engines without descriptor-overhead blowup.
    n_x_chunks = _largest_divisor_at_most(rows_per_step, x_chunks_target)

    # Prompt replication block: batches the per-row prompt writes; capped at a
    # few MiB so it never threatens VMEM (v7x: 64 MiB physical / 32 MiB scoped).
    per_row_bytes = P * D * itemsize
    bp_cap = max(1, min(32, prompt_block_bytes_cap // max(1, per_row_bytes)))
    prompt_block_rows = _largest_divisor_at_most(rows_per_step, bp_cap)

    kernel = functools.partial(
        _softprompt_dma_kernel,
        rows_per_step=rows_per_step,
        n_x_chunks=n_x_chunks,
        prompt_block_rows=prompt_block_rows,
    )

    # Cast + add a leading batch dim so the prompt source shape matches the
    # [*, P, D] destination slices (DMA requires matching src/dst shapes).
    prompt3 = soft_prompt.astype(dtype).reshape(1, P, D)

    # HBM traffic: read x once, read the prompt once (into VMEM), write output.
    bytes_accessed = itemsize * (B * S * D + P * D + B * out_seq * D)

    return pl.pallas_call(
        kernel,
        out_shape=jax.ShapeDtypeStruct((B, out_seq, D), dtype),
        grid=(grid_steps,),
        in_specs=[
            # Tiny prompt: VMEM-resident (same block every step).
            pl.BlockSpec((1, P, D), lambda g: (0, 0, 0)),
            # Input embeddings stay in HBM; the kernel DMAs them directly.
            pl.BlockSpec(memory_space=pl.ANY),
        ],
        out_specs=pl.BlockSpec(memory_space=pl.ANY),
        scratch_shapes=[
            pltpu.VMEM((prompt_block_rows, P, D), dtype),
            pltpu.SemaphoreType.DMA((n_x_chunks + 1,)),
        ],
        compiler_params=pltpu.CompilerParams(
            dimension_semantics=("parallel",),
        ),
        cost_estimate=pl.CostEstimate(
            flops=0,
            transcendentals=0,
            bytes_accessed=int(bytes_accessed),
        ),
    )(prompt3, input_embeds)


if __name__ == "__main__":
    # Small shapes consistent with the module; P and D chosen sublane/lane
    # aligned (P % 8 == 0 for f32, D % 128 == 0).
    P, D = 8, 128
    B, S = 2, 8

    key = jax.random.PRNGKey(0)
    k_prompt, k_x = jax.random.split(key)

    # Deterministic parameter init: nn.init.normal_(mean=0.0, std=0.02).
    soft_prompt = 0.02 * jax.random.normal(k_prompt, (P, D), dtype=jnp.float32)
    input_embeds = jax.random.normal(k_x, (B, S, D), dtype=jnp.float32)

    out = soft_prompt_forward(soft_prompt, input_embeds)
    out = jax.block_until_ready(out)

    # Reference check in plain JAX.
    ref = jnp.concatenate(
        [jnp.broadcast_to(soft_prompt[None], (B, P, D)), input_embeds], axis=1
    )
    assert out.shape == (B, P + S, D), out.shape
    assert jnp.allclose(out, ref), "mismatch vs reference"

    print("KERNEL_OK")
</pallas_src>

<mosaic_0001>
module attributes {stable_mosaic.version = 11 : i64} {
  func.func @_softprompt_dma_kernel(%arg0: i32, %arg1: memref<1x8x128xf32, #tpu.memory_space<vmem>>, %arg2: memref<2x8x128xf32, #tpu.memory_space<any>>, %arg3: memref<2x16x128xf32, #tpu.memory_space<any>>, %arg4: memref<1x8x128xf32, #tpu.memory_space<vmem>>, %arg5: memref<2x!tpu.dma_semaphore, #tpu.memory_space<semaphore_mem>>) attributes {dimension_semantics = [#tpu.dimension_semantics<parallel>], iteration_bounds = array<i64: 2>, scalar_prefetch = 0 : i64, scratch_operands = 2 : i64, tpu.core_type = #tpu.core_type<tc>, window_params = [{pipeline_mode = #tpu.pipeline_mode<synchronous>, transform_indices = @transform_0, window_bounds = array<i64: 1, 8, 128>}, {}, {}]} {
    %c1_i32 = arith.constant 1 : i32
    %0 = arith.muli %arg0, %c1_i32 : i32
    %1 = tpu.assume_multiple %0, 1 : i32
    %c0_i32 = arith.constant 0 : i32
    %2 = arith.addi %1, %c0_i32 : i32
    %c0_i32_0 = arith.constant 0 : i32
    %c0_i32_1 = arith.constant 0 : i32
    %c0_i32_2 = arith.constant 0 : i32
    %3 = tpu.memref_slice %arg2[%2, %c0_i32_1, %c0_i32_2] : memref<2x8x128xf32, #tpu.memory_space<any>> -> memref<1x8x128xf32, #tpu.memory_space<any>>
    %c8_i32 = arith.constant 8 : i32
    %c0_i32_3 = arith.constant 0 : i32
    %4 = tpu.memref_slice %arg3[%2, %c8_i32, %c0_i32_3] : memref<2x16x128xf32, #tpu.memory_space<any>> -> memref<1x8x128xf32, #tpu.memory_space<any>>
    %5 = tpu.memref_slice %arg5[%c0_i32_0] : memref<2x!tpu.dma_semaphore, #tpu.memory_space<semaphore_mem>> -> memref<1x!tpu.dma_semaphore, #tpu.memory_space<semaphore_mem>>
    %6 = tpu.memref_squeeze %5 : memref<1x!tpu.dma_semaphore, #tpu.memory_space<semaphore_mem>> -> memref<!tpu.dma_semaphore, #tpu.memory_space<semaphore_mem>>
    tpu.enqueue_dma source(%3 : memref<1x8x128xf32, #tpu.memory_space<any>>) target(%4 : memref<1x8x128xf32, #tpu.memory_space<any>>) target_semaphore(%6 : memref<!tpu.dma_semaphore, #tpu.memory_space<semaphore_mem>>)
    %c0 = arith.constant 0 : index
    %c0_4 = arith.constant 0 : index
    %c0_5 = arith.constant 0 : index
    %7 = vector.load %arg1[%c0, %c0_4, %c0_5] : memref<1x8x128xf32, #tpu.memory_space<vmem>>, vector<1x8x128xf32>
    %c0_6 = arith.constant 0 : index
    %c0_7 = arith.constant 0 : index
    %c0_8 = arith.constant 0 : index
    %8 = vector.load %arg4[%c0_6, %c0_7, %c0_8] : memref<1x8x128xf32, #tpu.memory_space<vmem>>, vector<1x8x128xf32>
    tpu.vector_store %arg4[%c0_6, %c0_7, %c0_8], %7 {strides = array<i32>} : memref<1x8x128xf32, #tpu.memory_space<vmem>>, vector<1x8x128xf32>,
    %c0_i32_9 = arith.constant 0 : i32
    %9 = arith.addi %1, %c0_i32_9 : i32
    %c1_i32_10 = arith.constant 1 : i32
    %c0_i32_11 = arith.constant 0 : i32
    %c0_i32_12 = arith.constant 0 : i32
    %10 = tpu.memref_slice %arg3[%9, %c0_i32_11, %c0_i32_12] : memref<2x16x128xf32, #tpu.memory_space<any>> -> memref<1x8x128xf32, #tpu.memory_space<any>>
    %11 = tpu.memref_slice %arg5[%c1_i32_10] : memref<2x!tpu.dma_semaphore, #tpu.memory_space<semaphore_mem>> -> memref<1x!tpu.dma_semaphore, #tpu.memory_space<semaphore_mem>>
    %12 = tpu.memref_squeeze %11 : memref<1x!tpu.dma_semaphore, #tpu.memory_space<semaphore_mem>> -> memref<!tpu.dma_semaphore, #tpu.memory_space<semaphore_mem>>
    tpu.enqueue_dma source(%arg4 : memref<1x8x128xf32, #tpu.memory_space<vmem>>) target(%10 : memref<1x8x128xf32, #tpu.memory_space<any>>) target_semaphore(%12 : memref<!tpu.dma_semaphore, #tpu.memory_space<semaphore_mem>>)
    %c1_i32_13 = arith.constant 1 : i32
    %c0_i32_14 = arith.constant 0 : i32
    %c0_i32_15 = arith.constant 0 : i32
    %13 = tpu.memref_slice %arg3[%9, %c0_i32_14, %c0_i32_15] : memref<2x16x128xf32, #tpu.memory_space<any>> -> memref<1x8x128xf32, #tpu.memory_space<any>>
    %14 = tpu.memref_slice %arg5[%c1_i32_13] : memref<2x!tpu.dma_semaphore, #tpu.memory_space<semaphore_mem>> -> memref<1x!tpu.dma_semaphore, #tpu.memory_space<semaphore_mem>>
    %15 = tpu.memref_squeeze %14 : memref<1x!tpu.dma_semaphore, #tpu.memory_space<semaphore_mem>> -> memref<!tpu.dma_semaphore, #tpu.memory_space<semaphore_mem>>
    tpu.wait_dma2 semaphore(%15 : memref<!tpu.dma_semaphore, #tpu.memory_space<semaphore_mem>>) src(%arg4 : memref<1x8x128xf32, #tpu.memory_space<vmem>>) dst(%13 : memref<1x8x128xf32, #tpu.memory_space<any>>)
    %c0_i32_16 = arith.constant 0 : i32
    %c0_i32_17 = arith.constant 0 : i32
    %c0_i32_18 = arith.constant 0 : i32
    %16 = tpu.memref_slice %arg2[%2, %c0_i32_17, %c0_i32_18] : memref<2x8x128xf32, #tpu.memory_space<any>> -> memref<1x8x128xf32, #tpu.memory_space<any>>
    %c8_i32_19 = arith.constant 8 : i32
    %c0_i32_20 = arith.constant 0 : i32
    %17 = tpu.memref_slice %arg3[%2, %c8_i32_19, %c0_i32_20] : memref<2x16x128xf32, #tpu.memory_space<any>> -> memref<1x8x128xf32, #tpu.memory_space<any>>
    %18 = tpu.memref_slice %arg5[%c0_i32_16] : memref<2x!tpu.dma_semaphore, #tpu.memory_space<semaphore_mem>> -> memref<1x!tpu.dma_semaphore, #tpu.memory_space<semaphore_mem>>
    %19 = tpu.memref_squeeze %18 : memref<1x!tpu.dma_semaphore, #tpu.memory_space<semaphore_mem>> -> memref<!tpu.dma_semaphore, #tpu.memory_space<semaphore_mem>>
    tpu.wait_dma2 semaphore(%19 : memref<!tpu.dma_semaphore, #tpu.memory_space<semaphore_mem>>) src(%16 : memref<1x8x128xf32, #tpu.memory_space<any>>) dst(%17 : memref<1x8x128xf32, #tpu.memory_space<any>>)
    return
  }
  func.func @transform_0(%arg0: i32) -> (i32, i32, i32) {
    %c0_i32 = arith.constant 0 : i32
    %c0_i32_0 = arith.constant 0 : i32
    %c0_i32_1 = arith.constant 0 : i32
    %c0_i32_2 = arith.constant 0 : i32
    return %c0_i32, %c0_i32_0, %c0_i32_1 : i32, i32, i32
  }
}

</mosaic_0001>

<bundles_post_ra>
// kernel: tpu_custom_call.1
= control target key start
LH: loop header
LB: loop body
LE: loop exit
PB: predicated region body
PF: predicated region fallthrough
CT: control target
= control target key end

     0   :  { %7 = vsyncpa [#allocation5], 0  ;;  %s265_s9 = smov 0   ;;  %s291_s0 = inlined_call_operand.hbm [shape: f32[1,8,128], index: 0, kind: input, shape index: {}]   ;;  %s292_s1 = inlined_call_operand.hbm [shape: f32[2,8,128], index: 1, kind: input, shape index: {}]   ;;  %s293_s2 = inlined_call_operand.hbm [shape: f32[2,16,128], index: 2, kind: output, shape index: {}]  }
   0x1 LB: > { %s41_s12 = sshll.u32 %s291_s0, 4  ;;  %s139_s13 = sadd.s32 4294967295, %s243_s9   ;;  %s243_s9 = sphi %s265_s9, %s13_s9   ;;  %s42_s12 = int_to_ptr.hbm [resolvable:$true] %s41_s12 }
   0x2   : > { %p141_p0 = scmp.lt.s32.totalorder %s243_s9, 1  ;;  %p159_p1 = scmp.ge.s32.totalorder %s243_s9, 1 }
   0x3   : > { %p160_p2 = scmp.eq.s32.totalorder %s139_s13, 0  ;;  %s245_s14 = smov [#allocation4]  }
   0x4   : > { %s43_s15 = sshll.u32 %s245_s14, 4  ;;  %54 = sbr.rel (%p141_p0) target bundleno = 32 (0x20), region = 24  ;;  %s44_s15 = int_to_ptr.vmem [resolvable:$true] %s43_s15 }
   0x5   : > { %p156_p3 = pnand %p160_p2, %p159_p1 }
   0x7   : > { %158 = dma.hbm_to_vmem [thread:$0]  (!%p156_p3), %s42_s12, 128, %s44_s15, [#allocation5]  }
   0x9   : > { %234 = dma.done.wait (%p160_p2), [#allocation5], 128  }
   0xa   : > { %236 = vsyncadd (%p160_p2), [#allocation5], 4294967168  ;;  %s146_s16 = sshll.u32 %s139_s13, 3  ;;  %s147_s17 = sshll.u32 %s139_s13, 4 }
   0xb   : > { %s64_s20 = scalar_lea.hbm %s292_s1, %s146_s16  ;;  %s121_s23 = scalar_lea.hbm %s293_s2, %s147_s17 }
   0xc   : > { %s122_s24 = scalar_lea.hbm %s121_s23, 8  ;;  %s72_s25 = sshll.u32 %s64_s20, 4  ;;  %s73_s25 = int_to_ptr.hbm [resolvable:$true] %s72_s25 }
   0xd   : > { %s74_s26 = sshll.u32 %s122_s24, 4  ;;  %s246_s27 = smov [#allocation3]   ;;  %s75_s26 = int_to_ptr.hbm [resolvable:$true] %s74_s26 }
   0xe   : > { %s247_s28 = smov [#allocation6]   ;;  %s248_s29 = smov 0  }
   0xf   : > { %78 = dma.general %s73_s25, 128, %s75_s26, %s246_s27, %s247_s28, [#allocation7], %s248_s29, 0  }
  0x10   : > { %s249_s30 = smov [#allocation2]   ;;  %s92_s4 = sshll.u32 %s121_s23, 4  ;;  %v79_v0 = vld [vmem:[#allocation4] sm:$0xff]  ;;  %s93_s4 = int_to_ptr.hbm [resolvable:$true] %s92_s4 }
  0x11   : > { %s90_s3 = sshll.u32 %s249_s30, 4  ;;  %80 = vst [vmem:[#allocation2] sm:$0xff] %v79_v0  ;;  %s217_s5 = sshra.s32 %s93_s4, 4  ;;  %s91_s3 = int_to_ptr.vmem [resolvable:$true] %s90_s3  ;;  %s218_s5 = int_to_ptr.hbm [resolvable:$true] %s217_s5 }
  0x12   : > { %s219_s6 = scalar_lea.hbm %s218_s5, 8  ;;  %s221_s10 = scalar_lea.hbm %s293_s2, 32 }
  0x13   : > { %p220_p4 = scmp.ne.s32.totalorder %s218_s5, %s219_s6  ;;  %p222_p5 = scmp.lt.s32.totalorder %s218_s5, %s293_s2 }
  0x14   : > { %p223_p6 = scmp.lt.s32.totalorder %s221_s10, %s219_s6 }
  0x16   : > { %p224_p7 = por %p223_p6, %p222_p5 }
  0x18   : > { %p225_p8 = pnand %p224_p7, %p220_p4 }
  0x1a   : > { %228 = shalt.err (!%p225_p8)  }
  0x1b   : > { %95 = dma.vmem_to_hbm [thread:$0]  %s91_s3, 128, %s93_s4, [#allocation3 + $0x1] }
  0x1c   : > { %237 = dma.done.wait [#allocation3 + $0x1], 128 }
  0x1d   : > { %238 = vsyncadd [#allocation3 + $0x1], 4294967168 }
  0x1e   : > { %239 = dma.done.wait [#allocation3], 128 }
  0x1f   : > { %240 = vsyncadd [#allocation3], 4294967168 }
  0x20 PF: > { %s13_s9 = sadd.s32 1, %s243_s9  }
  0x21   : > { %p10_p9 = scmp.ge.s32.totalorder %s13_s9, 3  }
  0x23   :  { %12 = sbr.rel (!%p10_p9) target bundleno = 1 (0x1), region = 49 }
  0x28   :  { %102 = vsyncpa [#allocation5], 1 }
  0x29   :  { %104 = vsyncpa [#allocation5 + $0x1], 1 }
  0x2a   :  { %105 = vsyncmov [#allocation3] }
  0x2d   :  { %s106_s13 = vpop.sfrf %105 }
  0x2e   :  { %p149_p10 = scmp.ne.s32.totalorder %s106_s13, 0 }
  0x30   :  { %110 = shalt.err (%p149_p10)  }
  0x31   :  { %112 = vsyncmov [#allocation3 + $0x1] }
  0x34   :  { %s113_s14 = vpop.sfrf %112 }
  0x35   :  { %p150_p11 = scmp.ne.s32.totalorder %s113_s14, 0 }
  0x37   :  { %117 = shalt.err (%p150_p11)  }

</bundles_post_ra>
